<compile_context>
chip_gen: v5e
topology: v5e:2x2
jax: 0.10.0
libtpu: 0.0.40
codegen_flags: <defaults>
</compile_context>

<pallas_src>
import functools

import jax
import jax.numpy as jnp
from jax.experimental import pallas as pl
from jax.experimental.pallas import tpu as pltpu

_BF16 = jnp.bfloat16
_EPS = 1e-5


# ----------------------------------------------------------------- device tuning
@functools.lru_cache(maxsize=None)
def _vmem_limit_bytes():
    """~3/4 of physical VMEM: ~96 MiB on 128-MiB v5e/v6e, ~48 MiB on 64-MiB v7x."""
    cap = 128 * 1024 * 1024
    try:
        cap = int(getattr(pltpu.get_tpu_info(), "vmem_capacity_bytes", cap))
    except Exception:
        pass
    return min((cap * 3) // 4, 96 * 1024 * 1024)


@functools.lru_cache(maxsize=None)
def _softmax_exp_dtype():
    """bf16 exp where the EUP supports bf16 (v6e/v7x); f32 on v5e and older."""
    try:
        kind = jax.devices()[0].device_kind.lower()
    except Exception:
        return jnp.float32
    if any(tag in kind for tag in ("v2", "v3", "v4", "v5")):
        return jnp.float32
    return _BF16


def _cparams(n_grid_axes):
    return pltpu.CompilerParams(
        dimension_semantics=("parallel",) * n_grid_axes,   # dual-TC sharding on v7x
        vmem_limit_bytes=_vmem_limit_bytes(),
    )


# --------------------------------------------------------------------------- math
def _layernorm(v, w, b):
    mu = jnp.mean(v, axis=-1, keepdims=True)
    var = jnp.mean(jnp.square(v - mu), axis=-1, keepdims=True)
    return (v - mu) * jax.lax.rsqrt(var + _EPS) * w + b


def _erf(x):
    # Abramowitz & Stegun 7.1.26 erf polynomial (exact-GELU semantics of nn.GELU()).
    # TODO(synk): offer tanh-GELU (EUP tanh) if exact-erf parity is not required —
    #             the polynomial is ~12 VALU ops/element and can bind on v6e/v7x.
    a1, a2, a3, a4, a5 = 0.254829592, -0.284496736, 1.421413741, -1.453152027, 1.061405429
    p = 0.3275911
    s = jnp.where(x >= 0.0, 1.0, -1.0)
    ax = jnp.abs(x)
    t = pl.reciprocal(1.0 + p * ax, approx=True)           # EUP slot, frees VPU
    poly = ((((a5 * t + a4) * t + a3) * t + a2) * t + a1) * t
    return s * (1.0 - poly * jnp.exp(-ax * ax))


def _gelu_exact(x):
    return 0.5 * x * (1.0 + _erf(x * 0.7071067811865476))


# ------------------------------------------------------------------------- kernels
def _qkv_kernel(x_ref, ln_w_ref, ln_b_ref, w_in_ref, b_in_ref, qkv_ref):
    """LayerNorm1 + fused QKV projection over a (TM, E) row tile -> bf16 (TM, 3E)."""
    x = x_ref[...]                                          # (TM, E) f32
    xn = _layernorm(x, ln_w_ref[...], ln_b_ref[...])
    qkv = jnp.dot(xn.astype(_BF16), w_in_ref[...],
                  preferred_element_type=jnp.float32) + b_in_ref[...]
    qkv_ref[...] = qkv.astype(qkv_ref.dtype)                # bf16 intermediate


def _attn_kernel(q_ref, k_ref, v_ref, o_ref, *, scale, exp_dtype):
    """Softmax attention for a (HG, TQ, hd) query tile against full-S keys/values.

    One leading-batch contraction per matmul (no per-head loop); exact softmax
    since the whole key axis is present in the tile.
    """
    q = q_ref[...]                                          # (HG, TQ, hd) bf16
    k = k_ref[...]                                          # (HG, S,  hd) bf16
    v = v_ref[...]                                          # (HG, S,  hd) bf16
    s = jnp.einsum('bqd,bkd->bqk', q, k,
                   preferred_element_type=jnp.float32) * scale     # (HG, TQ, S) f32
    m = jnp.max(s, axis=-1, keepdims=True)
    e = jnp.exp((s - m).astype(exp_dtype))                  # bf16 exp on v6e/v7x EUP
    denom = jnp.sum(e.astype(jnp.float32), axis=-1, keepdims=True)  # f32 accumulation
    inv = pl.reciprocal(denom, approx=True)
    p = (e * inv.astype(e.dtype)).astype(_BF16)
    o = jnp.einsum('bqk,bkd->bqd', p, v, preferred_element_type=jnp.float32)
    o_ref[...] = o.astype(o_ref.dtype)                      # bf16 intermediate


def _proj_mlp_kernel(x_ref, att_ref, w_out_ref, b_out_ref, ln_w_ref, ln_b_ref,
                     w1_ref, b1_ref, w2_ref, b2_ref, o_ref):
    """Attention out-proj + residual + LayerNorm2 + GELU MLP + residual, row-tiled."""
    x = x_ref[...]                                          # (TM, E) f32 residual stream
    att = att_ref[...]                                      # (TM, E) bf16 heads
    proj = jnp.dot(att, w_out_ref[...],
                   preferred_element_type=jnp.float32) + b_out_ref[...]
    x = x + proj                                            # residual 1
    xn = _layernorm(x, ln_w_ref[...], ln_b_ref[...])
    h = jnp.dot(xn.astype(_BF16), w1_ref[...],
                preferred_element_type=jnp.float32) + b1_ref[...]
    h = _gelu_exact(h)                                      # Dropout -> identity (eval)
    mlp = jnp.dot(h.astype(_BF16), w2_ref[...],
                  preferred_element_type=jnp.float32) + b2_ref[...]
    o_ref[...] = (x + mlp).astype(o_ref.dtype)              # residual 2 (f32)


# ------------------------------------------------------------------------- helpers
def _weight_spec(shape):
    """Constant-index weight spec: VMEM-resident across grid steps (never re-DMA'd),
    single-buffered so it doesn't pay the default 2x pipeline-buffer footprint."""
    nd = len(shape)
    imap = lambda i, _nd=nd: (0,) * _nd
    try:
        return pl.BlockSpec(tuple(shape), imap, pipeline_mode=pl.Buffered(1))
    except Exception:                       # older JAX without pipeline_mode support
        return pl.BlockSpec(tuple(shape), imap)


def _pick_row_tile(n, target=512):
    """Largest multiple-of-8 divisor of n <= target that still gives >= 2 grid steps."""
    for t in range(min(target, n), 7, -1):
        if n % t == 0 and t % 8 == 0 and n // t >= 2:
            return t
    return n


def _pick_lead_tile(n, target=8):
    """Largest divisor of n <= target that still gives >= 2 grid steps."""
    for t in range(min(target, n), 0, -1):
        if n % t == 0 and n // t >= 2:
            return t
    return n


# --------------------------------------------------------------------- block / stack
def encoder_block(x_bse, params, n_heads):
    (ln1_w, ln1_b, w_in, b_in, w_out, b_out,
     ln2_w, ln2_b, w1, b1, w2, b2) = params
    B, S, E = x_bse.shape
    H = n_heads
    hd = E // H
    Hdim = w1.shape[1]
    N = B * S
    TM = _pick_row_tile(N, target=512)

    x2d = x_bse.reshape(N, E)                               # f32 residual stream

    # ---- kernel 1: LayerNorm1 + fused QKV projection, row-tiled over B*S --------
    qkv2d = pl.pallas_call(
        _qkv_kernel,
        grid=(N // TM,),
        in_specs=[
            pl.BlockSpec((TM, E), lambda i: (i, 0)),
            _weight_spec(ln1_w.shape), _weight_spec(ln1_b.shape),
            _weight_spec(w_in.shape), _weight_spec(b_in.shape),
        ],
        out_specs=pl.BlockSpec((TM, 3 * E), lambda i: (i, 0)),
        out_shape=jax.ShapeDtypeStruct((N, 3 * E), _BF16),   # bf16 intermediate
        compiler_params=_cparams(1),
        cost_estimate=pl.CostEstimate(
            flops=6 * N * E * E + 10 * N * E,
            transcendentals=N,
            bytes_accessed=N * E * 4 + 3 * E * E * 2 + N * 3 * E * 2),
    )(x2d, ln1_w, ln1_b, w_in, b_in)

    # Wrapper-side head split (plain XLA, now bf16 => half the HBM traffic):
    # (N, 3E) -> three (B*H, S, hd) tensors with a leading (batch*head) axis.
    qkv = qkv2d.reshape(B, S, 3, H, hd)
    qkv = jnp.transpose(qkv, (2, 0, 3, 1, 4)).reshape(3, B * H, S, hd)
    q, k, v = qkv[0], qkv[1], qkv[2]

    BH = B * H
    HG = _pick_lead_tile(BH, 8)                 # head-group tile
    TQ = _pick_row_tile(S, target=256)          # query tile (bounds the score tensor)
    scale = 1.0 / float(hd) ** 0.5
    exp_dtype = _softmax_exp_dtype()

    # ---- kernel 2: batched softmax attention, tiled over (head-group, q-tile) ---
    # k/v index maps are constant along the q-tile axis -> stay VMEM-resident.
    att = pl.pallas_call(
        functools.partial(_attn_kernel, scale=scale, exp_dtype=exp_dtype),
        grid=(BH // HG, S // TQ),
        in_specs=[
            pl.BlockSpec((HG, TQ, hd), lambda i, j: (i, j, 0)),
            pl.BlockSpec((HG, S, hd), lambda i, j: (i, 0, 0)),
            pl.BlockSpec((HG, S, hd), lambda i, j: (i, 0, 0)),
        ],
        out_specs=pl.BlockSpec((HG, TQ, hd), lambda i, j: (i, j, 0)),
        out_shape=jax.ShapeDtypeStruct((BH, S, hd), _BF16),  # bf16 intermediate
        compiler_params=_cparams(2),
        cost_estimate=pl.CostEstimate(
            flops=4 * BH * S * S * hd,
            transcendentals=BH * S * S,
            bytes_accessed=4 * BH * S * hd * 2),
    )(q, k, v)

    # Wrapper-side head merge back to the (B*S, E) layout the out-projection wants
    # (bf16, so this round trip costs half of what it used to).
    att2d = jnp.transpose(att.reshape(B, H, S, hd), (0, 2, 1, 3)).reshape(N, E)

    # ---- kernel 3: out-proj + residual + LayerNorm2 + MLP + residual ------------
    y2d = pl.pallas_call(
        _proj_mlp_kernel,
        grid=(N // TM,),
        in_specs=[
            pl.BlockSpec((TM, E), lambda i: (i, 0)),     # f32 residual stream x
            pl.BlockSpec((TM, E), lambda i: (i, 0)),     # bf16 attention heads
            _weight_spec(w_out.shape), _weight_spec(b_out.shape),
            _weight_spec(ln2_w.shape), _weight_spec(ln2_b.shape),
            _weight_spec(w1.shape), _weight_spec(b1.shape),
            _weight_spec(w2.shape), _weight_spec(b2.shape),
        ],
        out_specs=pl.BlockSpec((TM, E), lambda i: (i, 0)),
        out_shape=jax.ShapeDtypeStruct((N, E), jnp.float32),
        compiler_params=_cparams(1),
        cost_estimate=pl.CostEstimate(
            flops=2 * N * E * E + 4 * N * E * Hdim + 20 * N * E,
            transcendentals=N * Hdim + N,
            bytes_accessed=2 * N * E * 4 + N * E * 2 + (E * E + 2 * E * Hdim) * 2),
    )(x2d, att2d, w_out, b_out, ln2_w, ln2_b, w1, b1, w2, b2)

    return y2d.reshape(B, S, E)


@functools.partial(jax.jit, static_argnames=("n_heads",))
def transformer_encoder(x_sbe, layer_params, n_heads):
    # (S, B, E) -> (B, S, E) glue transpose, run depth blocks, transpose back.
    x = jnp.transpose(x_sbe, (1, 0, 2))
    for p in layer_params:
        x = encoder_block(x, p, n_heads)
    return jnp.transpose(x, (1, 0, 2))


# ------------------------------------------------------------------------ params
def init_block_params(key, emb_dim, expansion):
    E = emb_dim
    Hd = expansion * E
    ks = jax.random.split(key, 8)

    def w(k, shape, scale=0.05):
        return (scale * jax.random.normal(k, shape)).astype(jnp.float32)

    ln1_w = jnp.ones((1, E), jnp.float32)
    ln1_b = jnp.zeros((1, E), jnp.float32)
    ln2_w = jnp.ones((1, E), jnp.float32)
    ln2_b = jnp.zeros((1, E), jnp.float32)
    in_w = w(ks[0], (3 * E, E))          # PyTorch (out, in) layout
    in_b = w(ks[1], (1, 3 * E), 0.02)
    out_w = w(ks[2], (E, E))
    out_b = w(ks[3], (1, E), 0.02)
    fc1_w = w(ks[4], (Hd, E))
    fc1_b = w(ks[5], (1, Hd), 0.02)
    fc2_w = w(ks[6], (E, Hd))
    fc2_b = w(ks[7], (1, E), 0.02)
    bf = jnp.bfloat16
    # matmul weights pre-transposed to (in, out) and stored bf16 (MXU-native, halves
    # HBM/VMEM footprint); biases / LayerNorm params stay f32 (f32 accumulation).
    return (ln1_w, ln1_b,
            in_w.T.astype(bf), in_b,
            out_w.T.astype(bf), out_b,
            ln2_w, ln2_b,
            fc1_w.T.astype(bf), fc1_b,
            fc2_w.T.astype(bf), fc2_b)


if __name__ == "__main__":
    # NOTE: toy shapes for the functional check only — perf conclusions require
    # >=128-friendly E / hd (e.g. E=768, hd=64) so lanes and vregs are actually used.
    depth, emb_dim, n_heads, expansion = 2, 32, 4, 4
    seq_len, batch = 8, 2

    key = jax.random.PRNGKey(0)
    kx, kp = jax.random.split(key)
    x = jax.random.normal(kx, (seq_len, batch, emb_dim), jnp.float32)  # (S, B, E)

    layer_keys = jax.random.split(kp, depth)
    params = tuple(init_block_params(k, emb_dim, expansion) for k in layer_keys)

    y = transformer_encoder(x, params, n_heads)
    jax.block_until_ready(y)
    assert y.shape == (seq_len, batch, emb_dim)
    assert bool(jnp.all(jnp.isfinite(y)))
    print("KERNEL_OK")
</pallas_src>

<mosaic_0001>
module attributes {stable_mosaic.version = 11 : i64} {
  func.func @_qkv_kernel(%arg0: i32, %arg1: memref<8x32xf32, #tpu.memory_space<vmem>>, %arg2: memref<1x32xf32, #tpu.memory_space<vmem>>, %arg3: memref<1x32xf32, #tpu.memory_space<vmem>>, %arg4: memref<32x96xbf16, #tpu.memory_space<vmem>>, %arg5: memref<1x96xf32, #tpu.memory_space<vmem>>, %arg6: memref<8x96xbf16, #tpu.memory_space<vmem>>) attributes {dimension_semantics = [#tpu.dimension_semantics<parallel>], iteration_bounds = array<i64: 2>, scalar_prefetch = 0 : i64, scratch_operands = 0 : i64, tpu.core_type = #tpu.core_type<tc>, window_params = [{transform_indices = @transform_0, window_bounds = array<i64: 8, 32>}, {pipeline_mode = #tpu.pipeline_mode<synchronous>, transform_indices = @transform_1, window_bounds = array<i64: 1, 32>}, {pipeline_mode = #tpu.pipeline_mode<synchronous>, transform_indices = @transform_2, window_bounds = array<i64: 1, 32>}, {pipeline_mode = #tpu.pipeline_mode<synchronous>, transform_indices = @transform_3, window_bounds = array<i64: 32, 96>}, {pipeline_mode = #tpu.pipeline_mode<synchronous>, transform_indices = @transform_4, window_bounds = array<i64: 1, 96>}, {transform_indices = @transform_5, window_bounds = array<i64: 8, 96>}]} {
    %c0 = arith.constant 0 : index
    %c0_0 = arith.constant 0 : index
    %0 = vector.load %arg1[%c0, %c0_0] : memref<8x32xf32, #tpu.memory_space<vmem>>, vector<8x32xf32>
    %c0_1 = arith.constant 0 : index
    %c0_2 = arith.constant 0 : index
    %1 = vector.load %arg2[%c0_1, %c0_2] : memref<1x32xf32, #tpu.memory_space<vmem>>, vector<1x32xf32>
    %c0_3 = arith.constant 0 : index
    %c0_4 = arith.constant 0 : index
    %2 = vector.load %arg3[%c0_3, %c0_4] : memref<1x32xf32, #tpu.memory_space<vmem>>, vector<1x32xf32>
    %cst = arith.constant dense<0.000000e+00> : vector<8xf32>
    %3 = vector.multi_reduction <add>, %0, %cst [1] : vector<8x32xf32> to vector<8xf32>
    %4 = vector.shape_cast %3 : vector<8xf32> to vector<8x1xf32>
    %cst_5 = arith.constant 3.200000e+01 : f32
    %5 = vector.broadcast %cst_5 : f32 to vector<8x1xf32>
    %6 = arith.divf %4, %5 : vector<8x1xf32>
    %7 = vector.broadcast %6 : vector<8x1xf32> to vector<8x32xf32>
    %8 = arith.subf %0, %7 : vector<8x32xf32>
    %9 = arith.mulf %8, %8 : vector<8x32xf32>
    %cst_6 = arith.constant dense<0.000000e+00> : vector<8xf32>
    %10 = vector.multi_reduction <add>, %9, %cst_6 [1] : vector<8x32xf32> to vector<8xf32>
    %11 = vector.shape_cast %10 : vector<8xf32> to vector<8x1xf32>
    %cst_7 = arith.constant 3.200000e+01 : f32
    %12 = vector.broadcast %cst_7 : f32 to vector<8x1xf32>
    %13 = arith.divf %11, %12 : vector<8x1xf32>
    %14 = vector.broadcast %6 : vector<8x1xf32> to vector<8x32xf32>
    %15 = arith.subf %0, %14 : vector<8x32xf32>
    %cst_8 = arith.constant 9.99999974E-6 : f32
    %16 = vector.broadcast %cst_8 : f32 to vector<8x1xf32>
    %17 = arith.addf %13, %16 : vector<8x1xf32>
    %18 = math.rsqrt %17 : vector<8x1xf32>
    %19 = vector.broadcast %18 : vector<8x1xf32> to vector<8x32xf32>
    %20 = arith.mulf %15, %19 : vector<8x32xf32>
    %21 = vector.broadcast %1 : vector<1x32xf32> to vector<8x32xf32>
    %22 = arith.mulf %20, %21 : vector<8x32xf32>
    %23 = vector.broadcast %2 : vector<1x32xf32> to vector<8x32xf32>
    %24 = arith.addf %22, %23 : vector<8x32xf32>
    %25 = arith.truncf %24 : vector<8x32xf32> to vector<8x32xbf16>
    %c0_9 = arith.constant 0 : index
    %c0_10 = arith.constant 0 : index
    %26 = vector.load %arg4[%c0_9, %c0_10] : memref<32x96xbf16, #tpu.memory_space<vmem>>, vector<32x96xbf16>
    %cst_11 = arith.constant dense<0.000000e+00> : vector<8x96xf32>
    %27 = tpu.matmul %25, %26, %cst_11 {dimension_numbers = #tpu.dot_dimension_numbers<[1], [0], [0], [1], [0, 0, 1, 1], [], []>} : vector<8x32xbf16>, vector<32x96xbf16>, vector<8x96xf32> -> vector<8x96xf32>
    %c0_12 = arith.constant 0 : index
    %c0_13 = arith.constant 0 : index
    %28 = vector.load %arg5[%c0_12, %c0_13] : memref<1x96xf32, #tpu.memory_space<vmem>>, vector<1x96xf32>
    %29 = vector.broadcast %28 : vector<1x96xf32> to vector<8x96xf32>
    %30 = arith.addf %27, %29 : vector<8x96xf32>
    %31 = arith.truncf %30 : vector<8x96xf32> to vector<8x96xbf16>
    %c0_14 = arith.constant 0 : index
    %c0_15 = arith.constant 0 : index
    %32 = vector.load %arg6[%c0_14, %c0_15] : memref<8x96xbf16, #tpu.memory_space<vmem>>, vector<8x96xbf16>
    tpu.vector_store %arg6[%c0_14, %c0_15], %31 {strides = array<i32>} : memref<8x96xbf16, #tpu.memory_space<vmem>>, vector<8x96xbf16>,
    return
  }
  func.func @transform_0(%arg0: i32) -> (i32, i32) {
    %c0_i32 = arith.constant 0 : i32
    %c0_i32_0 = arith.constant 0 : i32
    return %arg0, %c0_i32 : i32, i32
  }
  func.func @transform_1(%arg0: i32) -> (i32, i32) {
    %c0_i32 = arith.constant 0 : i32
    %c0_i32_0 = arith.constant 0 : i32
    %c0_i32_1 = arith.constant 0 : i32
    return %c0_i32, %c0_i32_0 : i32, i32
  }
  func.func @transform_2(%arg0: i32) -> (i32, i32) {
    %c0_i32 = arith.constant 0 : i32
    %c0_i32_0 = arith.constant 0 : i32
    %c0_i32_1 = arith.constant 0 : i32
    return %c0_i32, %c0_i32_0 : i32, i32
  }
  func.func @transform_3(%arg0: i32) -> (i32, i32) {
    %c0_i32 = arith.constant 0 : i32
    %c0_i32_0 = arith.constant 0 : i32
    %c0_i32_1 = arith.constant 0 : i32
    return %c0_i32, %c0_i32_0 : i32, i32
  }
  func.func @transform_4(%arg0: i32) -> (i32, i32) {
    %c0_i32 = arith.constant 0 : i32
    %c0_i32_0 = arith.constant 0 : i32
    %c0_i32_1 = arith.constant 0 : i32
    return %c0_i32, %c0_i32_0 : i32, i32
  }
  func.func @transform_5(%arg0: i32) -> (i32, i32) {
    %c0_i32 = arith.constant 0 : i32
    %c0_i32_0 = arith.constant 0 : i32
    return %arg0, %c0_i32 : i32, i32
  }
}

module attributes {stable_mosaic.version = 11 : i64} {
  func.func @_attn_kernel(%arg0: i32, %arg1: i32, %arg2: memref<4x8x8xbf16, #tpu.memory_space<vmem>>, %arg3: memref<4x8x8xbf16, #tpu.memory_space<vmem>>, %arg4: memref<4x8x8xbf16, #tpu.memory_space<vmem>>, %arg5: memref<4x8x8xbf16, #tpu.memory_space<vmem>>) attributes {dimension_semantics = [#tpu.dimension_semantics<parallel>, #tpu.dimension_semantics<parallel>], iteration_bounds = array<i64: 2, 1>, scalar_prefetch = 0 : i64, scratch_operands = 0 : i64, tpu.core_type = #tpu.core_type<tc>, window_params = [{transform_indices = @transform_0, window_bounds = array<i64: 4, 8, 8>}, {transform_indices = @transform_1, window_bounds = array<i64: 4, 8, 8>}, {transform_indices = @transform_2, window_bounds = array<i64: 4, 8, 8>}, {transform_indices = @transform_3, window_bounds = array<i64: 4, 8, 8>}]} {
    %c0 = arith.constant 0 : index
    %c0_0 = arith.constant 0 : index
    %c0_1 = arith.constant 0 : index
    %0 = vector.load %arg2[%c0, %c0_0, %c0_1] : memref<4x8x8xbf16, #tpu.memory_space<vmem>>, vector<4x8x8xbf16>
    %c0_2 = arith.constant 0 : index
    %c0_3 = arith.constant 0 : index
    %c0_4 = arith.constant 0 : index
    %1 = vector.load %arg3[%c0_2, %c0_3, %c0_4] : memref<4x8x8xbf16, #tpu.memory_space<vmem>>, vector<4x8x8xbf16>
    %c0_5 = arith.constant 0 : index
    %c0_6 = arith.constant 0 : index
    %c0_7 = arith.constant 0 : index
    %2 = vector.load %arg4[%c0_5, %c0_6, %c0_7] : memref<4x8x8xbf16, #tpu.memory_space<vmem>>, vector<4x8x8xbf16>
    "tpu.trace_start"() <{level = 10 : i32, message = "bqd,bkd->bqk"}> : () -> ()
    %cst = arith.constant dense<0.000000e+00> : vector<4x8x8xf32>
    %3 = tpu.matmul %0, %1, %cst {dimension_numbers = #tpu.dot_dimension_numbers<[2], [2], [1], [1], [0, 0, 0, 1, 1, 1], [0], [0]>} : vector<4x8x8xbf16>, vector<4x8x8xbf16>, vector<4x8x8xf32> -> vector<4x8x8xf32>
    "tpu.trace_stop"() : () -> ()
    %cst_8 = arith.constant 0.353553385 : f32
    %4 = vector.broadcast %cst_8 : f32 to vector<4x8x8xf32>
    %5 = arith.mulf %3, %4 : vector<4x8x8xf32>
    %cst_9 = arith.constant dense<0xFF800000> : vector<4x8xf32>
    %6 = vector.multi_reduction <maximumf>, %5, %cst_9 [2] : vector<4x8x8xf32> to vector<4x8xf32>
    %7 = vector.shape_cast %6 : vector<4x8xf32> to vector<4x8x1xf32>
    %8 = vector.broadcast %7 : vector<4x8x1xf32> to vector<4x8x8xf32>
    %9 = arith.subf %5, %8 : vector<4x8x8xf32>
    %10 = arith.truncf %9 : vector<4x8x8xf32> to vector<4x8x8xbf16>
    %11 = math.exp %10 : vector<4x8x8xbf16>
    %12 = arith.extf %11 : vector<4x8x8xbf16> to vector<4x8x8xf32>
    %cst_10 = arith.constant dense<0.000000e+00> : vector<4x8xf32>
    %13 = vector.multi_reduction <add>, %12, %cst_10 [2] : vector<4x8x8xf32> to vector<4x8xf32>
    %14 = vector.shape_cast %13 : vector<4x8xf32> to vector<4x8x1xf32>
    %15 = tpu.reciprocal %14 {approx = true} : vector<4x8x1xf32> -> vector<4x8x1xf32>
    %16 = arith.truncf %15 : vector<4x8x1xf32> to vector<4x8x1xbf16>
    %17 = vector.broadcast %16 : vector<4x8x1xbf16> to vector<4x8x8xbf16>
    %18 = arith.mulf %11, %17 : vector<4x8x8xbf16>
    "tpu.trace_start"() <{level = 10 : i32, message = "bqk,bkd->bqd"}> : () -> ()
    %cst_11 = arith.constant dense<0.000000e+00> : vector<4x8x8xf32>
    %19 = tpu.matmul %18, %2, %cst_11 {dimension_numbers = #tpu.dot_dimension_numbers<[2], [1], [1], [2], [0, 0, 0, 1, 1, 2], [0], [0]>} : vector<4x8x8xbf16>, vector<4x8x8xbf16>, vector<4x8x8xf32> -> vector<4x8x8xf32>
    "tpu.trace_stop"() : () -> ()
    %20 = arith.truncf %19 : vector<4x8x8xf32> to vector<4x8x8xbf16>
    %c0_12 = arith.constant 0 : index
    %c0_13 = arith.constant 0 : index
    %c0_14 = arith.constant 0 : index
    %21 = vector.load %arg5[%c0_12, %c0_13, %c0_14] : memref<4x8x8xbf16, #tpu.memory_space<vmem>>, vector<4x8x8xbf16>
    tpu.vector_store %arg5[%c0_12, %c0_13, %c0_14], %20 {strides = array<i32>} : memref<4x8x8xbf16, #tpu.memory_space<vmem>>, vector<4x8x8xbf16>,
    return
  }
  func.func @transform_0(%arg0: i32, %arg1: i32) -> (i32, i32, i32) {
    %c0_i32 = arith.constant 0 : i32
    %c0_i32_0 = arith.constant 0 : i32
    return %arg0, %arg1, %c0_i32 : i32, i32, i32
  }
  func.func @transform_1(%arg0: i32, %arg1: i32) -> (i32, i32, i32) {
    %c0_i32 = arith.constant 0 : i32
    %c0_i32_0 = arith.constant 0 : i32
    %c0_i32_1 = arith.constant 0 : i32
    return %arg0, %c0_i32, %c0_i32_0 : i32, i32, i32
  }
  func.func @transform_2(%arg0: i32, %arg1: i32) -> (i32, i32, i32) {
    %c0_i32 = arith.constant 0 : i32
    %c0_i32_0 = arith.constant 0 : i32
    %c0_i32_1 = arith.constant 0 : i32
    return %arg0, %c0_i32, %c0_i32_0 : i32, i32, i32
  }
  func.func @transform_3(%arg0: i32, %arg1: i32) -> (i32, i32, i32) {
    %c0_i32 = arith.constant 0 : i32
    %c0_i32_0 = arith.constant 0 : i32
    return %arg0, %arg1, %c0_i32 : i32, i32, i32
  }
}

module attributes {stable_mosaic.version = 11 : i64} {
  func.func @_proj_mlp_kernel(%arg0: i32, %arg1: memref<8x32xf32, #tpu.memory_space<vmem>>, %arg2: memref<8x32xbf16, #tpu.memory_space<vmem>>, %arg3: memref<32x32xbf16, #tpu.memory_space<vmem>>, %arg4: memref<1x32xf32, #tpu.memory_space<vmem>>, %arg5: memref<1x32xf32, #tpu.memory_space<vmem>>, %arg6: memref<1x32xf32, #tpu.memory_space<vmem>>, %arg7: memref<32x128xbf16, #tpu.memory_space<vmem>>, %arg8: memref<1x128xf32, #tpu.memory_space<vmem>>, %arg9: memref<128x32xbf16, #tpu.memory_space<vmem>>, %arg10: memref<1x32xf32, #tpu.memory_space<vmem>>, %arg11: memref<8x32xf32, #tpu.memory_space<vmem>>) attributes {dimension_semantics = [#tpu.dimension_semantics<parallel>], iteration_bounds = array<i64: 2>, scalar_prefetch = 0 : i64, scratch_operands = 0 : i64, tpu.core_type = #tpu.core_type<tc>, window_params = [{transform_indices = @transform_0, window_bounds = array<i64: 8, 32>}, {transform_indices = @transform_1, window_bounds = array<i64: 8, 32>}, {pipeline_mode = #tpu.pipeline_mode<synchronous>, transform_indices = @transform_2, window_bounds = array<i64: 32, 32>}, {pipeline_mode = #tpu.pipeline_mode<synchronous>, transform_indices = @transform_3, window_bounds = array<i64: 1, 32>}, {pipeline_mode = #tpu.pipeline_mode<synchronous>, transform_indices = @transform_4, window_bounds = array<i64: 1, 32>}, {pipeline_mode = #tpu.pipeline_mode<synchronous>, transform_indices = @transform_5, window_bounds = array<i64: 1, 32>}, {pipeline_mode = #tpu.pipeline_mode<synchronous>, transform_indices = @transform_6, window_bounds = array<i64: 32, 128>}, {pipeline_mode = #tpu.pipeline_mode<synchronous>, transform_indices = @transform_7, window_bounds = array<i64: 1, 128>}, {pipeline_mode = #tpu.pipeline_mode<synchronous>, transform_indices = @transform_8, window_bounds = array<i64: 128, 32>}, {pipeline_mode = #tpu.pipeline_mode<synchronous>, transform_indices = @transform_9, window_bounds = array<i64: 1, 32>}, {transform_indices = @transform_10, window_bounds = array<i64: 8, 32>}]} {
    %c0 = arith.constant 0 : index
    %c0_0 = arith.constant 0 : index
    %0 = vector.load %arg1[%c0, %c0_0] : memref<8x32xf32, #tpu.memory_space<vmem>>, vector<8x32xf32>
    %c0_1 = arith.constant 0 : index
    %c0_2 = arith.constant 0 : index
    %1 = vector.load %arg2[%c0_1, %c0_2] : memref<8x32xbf16, #tpu.memory_space<vmem>>, vector<8x32xbf16>
    %c0_3 = arith.constant 0 : index
    %c0_4 = arith.constant 0 : index
    %2 = vector.load %arg3[%c0_3, %c0_4] : memref<32x32xbf16, #tpu.memory_space<vmem>>, vector<32x32xbf16>
    %cst = arith.constant dense<0.000000e+00> : vector<8x32xf32>
    %3 = tpu.matmul %1, %2, %cst {dimension_numbers = #tpu.dot_dimension_numbers<[1], [0], [0], [1], [0, 0, 1, 1], [], []>} : vector<8x32xbf16>, vector<32x32xbf16>, vector<8x32xf32> -> vector<8x32xf32>
    %c0_5 = arith.constant 0 : index
    %c0_6 = arith.constant 0 : index
    %4 = vector.load %arg4[%c0_5, %c0_6] : memref<1x32xf32, #tpu.memory_space<vmem>>, vector<1x32xf32>
    %5 = vector.broadcast %4 : vector<1x32xf32> to vector<8x32xf32>
    %6 = arith.addf %3, %5 : vector<8x32xf32>
    %7 = arith.addf %0, %6 : vector<8x32xf32>
    %c0_7 = arith.constant 0 : index
    %c0_8 = arith.constant 0 : index
    %8 = vector.load %arg5[%c0_7, %c0_8] : memref<1x32xf32, #tpu.memory_space<vmem>>, vector<1x32xf32>
    %c0_9 = arith.constant 0 : index
    %c0_10 = arith.constant 0 : index
    %9 = vector.load %arg6[%c0_9, %c0_10] : memref<1x32xf32, #tpu.memory_space<vmem>>, vector<1x32xf32>
    %cst_11 = arith.constant dense<0.000000e+00> : vector<8xf32>
    %10 = vector.multi_reduction <add>, %7, %cst_11 [1] : vector<8x32xf32> to vector<8xf32>
    %11 = vector.shape_cast %10 : vector<8xf32> to vector<8x1xf32>
    %cst_12 = arith.constant 3.200000e+01 : f32
    %12 = vector.broadcast %cst_12 : f32 to vector<8x1xf32>
    %13 = arith.divf %11, %12 : vector<8x1xf32>
    %14 = vector.broadcast %13 : vector<8x1xf32> to vector<8x32xf32>
    %15 = arith.subf %7, %14 : vector<8x32xf32>
    %16 = arith.mulf %15, %15 : vector<8x32xf32>
    %cst_13 = arith.constant dense<0.000000e+00> : vector<8xf32>
    %17 = vector.multi_reduction <add>, %16, %cst_13 [1] : vector<8x32xf32> to vector<8xf32>
    %18 = vector.shape_cast %17 : vector<8xf32> to vector<8x1xf32>
    %cst_14 = arith.constant 3.200000e+01 : f32
    %19 = vector.broadcast %cst_14 : f32 to vector<8x1xf32>
    %20 = arith.divf %18, %19 : vector<8x1xf32>
    %21 = vector.broadcast %13 : vector<8x1xf32> to vector<8x32xf32>
    %22 = arith.subf %7, %21 : vector<8x32xf32>
    %cst_15 = arith.constant 9.99999974E-6 : f32
    %23 = vector.broadcast %cst_15 : f32 to vector<8x1xf32>
    %24 = arith.addf %20, %23 : vector<8x1xf32>
    %25 = math.rsqrt %24 : vector<8x1xf32>
    %26 = vector.broadcast %25 : vector<8x1xf32> to vector<8x32xf32>
    %27 = arith.mulf %22, %26 : vector<8x32xf32>
    %28 = vector.broadcast %8 : vector<1x32xf32> to vector<8x32xf32>
    %29 = arith.mulf %27, %28 : vector<8x32xf32>
    %30 = vector.broadcast %9 : vector<1x32xf32> to vector<8x32xf32>
    %31 = arith.addf %29, %30 : vector<8x32xf32>
    %32 = arith.truncf %31 : vector<8x32xf32> to vector<8x32xbf16>
    %c0_16 = arith.constant 0 : index
    %c0_17 = arith.constant 0 : index
    %33 = vector.load %arg7[%c0_16, %c0_17] : memref<32x128xbf16, #tpu.memory_space<vmem>>, vector<32x128xbf16>
    %cst_18 = arith.constant dense<0.000000e+00> : vector<8x128xf32>
    %34 = tpu.matmul %32, %33, %cst_18 {dimension_numbers = #tpu.dot_dimension_numbers<[1], [0], [0], [1], [0, 0, 1, 1], [], []>} : vector<8x32xbf16>, vector<32x128xbf16>, vector<8x128xf32> -> vector<8x128xf32>
    %c0_19 = arith.constant 0 : index
    %c0_20 = arith.constant 0 : index
    %35 = vector.load %arg8[%c0_19, %c0_20] : memref<1x128xf32, #tpu.memory_space<vmem>>, vector<1x128xf32>
    %36 = vector.broadcast %35 : vector<1x128xf32> to vector<8x128xf32>
    %37 = arith.addf %34, %36 : vector<8x128xf32>
    %cst_21 = arith.constant 5.000000e-01 : f32
    %38 = vector.broadcast %cst_21 : f32 to vector<8x128xf32>
    %39 = arith.mulf %38, %37 : vector<8x128xf32>
    %cst_22 = arith.constant 0.707106769 : f32
    %40 = vector.broadcast %cst_22 : f32 to vector<8x128xf32>
    %41 = arith.mulf %37, %40 : vector<8x128xf32>
    %cst_23 = arith.constant 0.000000e+00 : f32
    %42 = vector.broadcast %cst_23 : f32 to vector<8x128xf32>
    %43 = arith.cmpf oge, %41, %42 : vector<8x128xf32>
    %cst_24 = arith.constant 1.000000e+00 : f32
    %cst_25 = arith.constant -1.000000e+00 : f32
    %44 = vector.broadcast %cst_24 : f32 to vector<8x128xf32>
    %45 = vector.broadcast %cst_25 : f32 to vector<8x128xf32>
    %46 = arith.select %43, %44, %45 : vector<8x128xi1>, vector<8x128xf32>
    %47 = math.absf %41 : vector<8x128xf32>
    %cst_26 = arith.constant 0.327591091 : f32
    %48 = vector.broadcast %cst_26 : f32 to vector<8x128xf32>
    %49 = arith.mulf %48, %47 : vector<8x128xf32>
    %cst_27 = arith.constant 1.000000e+00 : f32
    %50 = vector.broadcast %cst_27 : f32 to vector<8x128xf32>
    %51 = arith.addf %50, %49 : vector<8x128xf32>
    %52 = tpu.reciprocal %51 {approx = true} : vector<8x128xf32> -> vector<8x128xf32>
    %cst_28 = arith.constant 1.06140542 : f32
    %53 = vector.broadcast %cst_28 : f32 to vector<8x128xf32>
    %54 = arith.mulf %53, %52 : vector<8x128xf32>
    %cst_29 = arith.constant -1.45315206 : f32
    %55 = vector.broadcast %cst_29 : f32 to vector<8x128xf32>
    %56 = arith.addf %54, %55 : vector<8x128xf32>
    %57 = arith.mulf %56, %52 : vector<8x128xf32>
    %cst_30 = arith.constant 1.42141378 : f32
    %58 = vector.broadcast %cst_30 : f32 to vector<8x128xf32>
    %59 = arith.addf %57, %58 : vector<8x128xf32>
    %60 = arith.mulf %59, %52 : vector<8x128xf32>
    %cst_31 = arith.constant -0.284496725 : f32
    %61 = vector.broadcast %cst_31 : f32 to vector<8x128xf32>
    %62 = arith.addf %60, %61 : vector<8x128xf32>
    %63 = arith.mulf %62, %52 : vector<8x128xf32>
    %cst_32 = arith.constant 0.254829586 : f32
    %64 = vector.broadcast %cst_32 : f32 to vector<8x128xf32>
    %65 = arith.addf %63, %64 : vector<8x128xf32>
    %66 = arith.mulf %65, %52 : vector<8x128xf32>
    %cst_33 = arith.constant 0.000000e+00 : f32
    %67 = vector.broadcast %cst_33 : f32 to vector<8x128xf32>
    %68 = arith.subf %67, %47 : vector<8x128xf32>
    %69 = arith.mulf %68, %47 : vector<8x128xf32>
    %70 = math.exp %69 : vector<8x128xf32>
    %71 = arith.mulf %66, %70 : vector<8x128xf32>
    %cst_34 = arith.constant 1.000000e+00 : f32
    %72 = vector.broadcast %cst_34 : f32 to vector<8x128xf32>
    %73 = arith.subf %72, %71 : vector<8x128xf32>
    %74 = arith.mulf %46, %73 : vector<8x128xf32>
    %cst_35 = arith.constant 1.000000e+00 : f32
    %75 = vector.broadcast %cst_35 : f32 to vector<8x128xf32>
    %76 = arith.addf %75, %74 : vector<8x128xf32>
    %77 = arith.mulf %39, %76 : vector<8x128xf32>
    %78 = arith.truncf %77 : vector<8x128xf32> to vector<8x128xbf16>
    %c0_36 = arith.constant 0 : index
    %c0_37 = arith.constant 0 : index
    %79 = vector.load %arg9[%c0_36, %c0_37] : memref<128x32xbf16, #tpu.memory_space<vmem>>, vector<128x32xbf16>
    %cst_38 = arith.constant dense<0.000000e+00> : vector<8x32xf32>
    %80 = tpu.matmul %78, %79, %cst_38 {dimension_numbers = #tpu.dot_dimension_numbers<[1], [0], [0], [1], [0, 0, 1, 1], [], []>} : vector<8x128xbf16>, vector<128x32xbf16>, vector<8x32xf32> -> vector<8x32xf32>
    %c0_39 = arith.constant 0 : index
    %c0_40 = arith.constant 0 : index
    %81 = vector.load %arg10[%c0_39, %c0_40] : memref<1x32xf32, #tpu.memory_space<vmem>>, vector<1x32xf32>
    %82 = vector.broadcast %81 : vector<1x32xf32> to vector<8x32xf32>
    %83 = arith.addf %80, %82 : vector<8x32xf32>
    %84 = arith.addf %7, %83 : vector<8x32xf32>
    %c0_41 = arith.constant 0 : index
    %c0_42 = arith.constant 0 : index
    %85 = vector.load %arg11[%c0_41, %c0_42] : memref<8x32xf32, #tpu.memory_space<vmem>>, vector<8x32xf32>
    tpu.vector_store %arg11[%c0_41, %c0_42], %84 {strides = array<i32>} : memref<8x32xf32, #tpu.memory_space<vmem>>, vector<8x32xf32>,
    return
  }
  func.func @transform_0(%arg0: i32) -> (i32, i32) {
    %c0_i32 = arith.constant 0 : i32
    %c0_i32_0 = arith.constant 0 : i32
    return %arg0, %c0_i32 : i32, i32
  }
  func.func @transform_1(%arg0: i32) -> (i32, i32) {
    %c0_i32 = arith.constant 0 : i32
    %c0_i32_0 = arith.constant 0 : i32
    return %arg0, %c0_i32 : i32, i32
  }
  func.func @transform_2(%arg0: i32) -> (i32, i32) {
    %c0_i32 = arith.constant 0 : i32
    %c0_i32_0 = arith.constant 0 : i32
    %c0_i32_1 = arith.constant 0 : i32
    return %c0_i32, %c0_i32_0 : i32, i32
  }
  func.func @transform_3(%arg0: i32) -> (i32, i32) {
    %c0_i32 = arith.constant 0 : i32
    %c0_i32_0 = arith.constant 0 : i32
    %c0_i32_1 = arith.constant 0 : i32
    return %c0_i32, %c0_i32_0 : i32, i32
  }
  func.func @transform_4(%arg0: i32) -> (i32, i32) {
    %c0_i32 = arith.constant 0 : i32
    %c0_i32_0 = arith.constant 0 : i32
    %c0_i32_1 = arith.constant 0 : i32
    return %c0_i32, %c0_i32_0 : i32, i32
  }
  func.func @transform_5(%arg0: i32) -> (i32, i32) {
    %c0_i32 = arith.constant 0 : i32
    %c0_i32_0 = arith.constant 0 : i32
    %c0_i32_1 = arith.constant 0 : i32
    return %c0_i32, %c0_i32_0 : i32, i32
  }
  func.func @transform_6(%arg0: i32) -> (i32, i32) {
    %c0_i32 = arith.constant 0 : i32
    %c0_i32_0 = arith.constant 0 : i32
    %c0_i32_1 = arith.constant 0 : i32
    return %c0_i32, %c0_i32_0 : i32, i32
  }
  func.func @transform_7(%arg0: i32) -> (i32, i32) {
    %c0_i32 = arith.constant 0 : i32
    %c0_i32_0 = arith.constant 0 : i32
    %c0_i32_1 = arith.constant 0 : i32
    return %c0_i32, %c0_i32_0 : i32, i32
  }
  func.func @transform_8(%arg0: i32) -> (i32, i32) {
    %c0_i32 = arith.constant 0 : i32
    %c0_i32_0 = arith.constant 0 : i32
    %c0_i32_1 = arith.constant 0 : i32
    return %c0_i32, %c0_i32_0 : i32, i32
  }
  func.func @transform_9(%arg0: i32) -> (i32, i32) {
    %c0_i32 = arith.constant 0 : i32
    %c0_i32_0 = arith.constant 0 : i32
    %c0_i32_1 = arith.constant 0 : i32
    return %c0_i32, %c0_i32_0 : i32, i32
  }
  func.func @transform_10(%arg0: i32) -> (i32, i32) {
    %c0_i32 = arith.constant 0 : i32
    %c0_i32_0 = arith.constant 0 : i32
    return %arg0, %c0_i32 : i32, i32
  }
}

</mosaic_0001>

<bundles_post_ra>
// kernel: transformer_encoder.6
= control target key start
LH: loop header
LB: loop body
LE: loop exit
PB: predicated region body
PF: predicated region fallthrough
CT: control target
= control target key end

     0   :  { %s430_s18 = smov 0   ;;  %s469_s0 = inlined_call_operand.vmem [shape: f32[16,32], index: 0, kind: input, shape index: {}]   ;;  %s470_s1 = inlined_call_operand.vmem [shape: f32[1,32], index: 1, kind: input, shape index: {}]   ;;  %s471_s2 = inlined_call_operand.vmem [shape: f32[1,32], index: 2, kind: input, shape index: {}]   ;;  %s472_s3 = inlined_call_operand.vmem [shape: bf16[32,96], index: 3, kind: input, shape index: {}]   ;;  %s473_s4 = inlined_call_operand.vmem [shape: f32[1,96], index: 4, kind: input, shape index: {}]   ;;  %s474_s5 = inlined_call_operand.vmem [shape: bf16[16,96], index: 5, kind: output, shape index: {}]  }
   0x1 LB: > { %s355_s19 = sadd.s32 4294967295, %s397_s18   ;;  %p359_p0 = scmp.ge.s32.totalorder %s397_s18, 1  ;;  %s397_s18 = sphi %s430_s18, %s15_s18  }
   0x2   : > { %p186_p1 = scmp.lt.s32.totalorder %s397_s18, 3 }
   0x4   : > { %p187_p2 = pnand %p359_p0, %p186_p1 }
   0x5   : > { %p212_p3 = scmp.lt.s32.totalorder (!%p187_p2), %s355_s19, 1 }
   0x6   : > { %190 = sbr.rel (%p187_p2) target bundleno = 419 (0x1a3), region = 40 }
   0xb   : > { %s476_s19 = smov (!%p212_p3, %s355_s19), 1  ;;  %vm224_vm0 = vcmask 261120   ;;  %v399_v2 = vmov 32.0   ;;  %v374_v14 = vld [vmem:[%s472_s3 + $0x8] sm:$0xff]  ;;  %v373_v15 = vld [vmem:[%s472_s3] sm:$0xff]  ;;  %vm300_vm5 = vcmask 781312  }
   0xc   : > { %s360_s20 = sshll.u32 %s476_s19, 3  ;;  %387 = vrcp.f32 %v399_v2  ;;  %292 = vmatpush.bf16.msra.mxu0 %v374_v14  ;;  %v384_v25 = vld [vmem:[%s470_s1] ss:$0 sm:$0xff]  ;;  %s361_s9 = sshll.u32 %s476_s19, 2 }
   0xd   : > { %s215_s23 = scalar_lea.vmem %s469_s0, %s360_s20  ;;  %v385_v28 = vld [vmem:[%s471_s2] ss:$0 sm:$0xff]  ;;  %s219_s12 = scalar_lea.vmem %s474_s5, %s361_s9 }
   0xe   : > { %v221_v0 = vld [vmem:[%s215_s23] sm:$0xff] }
   0xf   : > { %v225_v1 = vsel %vm224_vm0, %v221_v0, 0.0  ;;  %v386_v32 = vld [vmem:[%s473_s4] ss:$0 sm:$0xff] }
  0x10   : > { %226 = vadd.xlane.f32.xlu0 %v225_v1  ;;  %293 = vmatpush.bf16.msra.mxu0 %v373_v15 }
  0x12   : > { %v388_v3 = vpop.eup %387 }
  0x13   : > { %v229_v4 = vmul.f32 32.0, %v388_v3  ;;  %vm233_vm1 = vweird.f32 %v388_v3 }
  0x15   : > { %v230_v5 = vsub.f32 1.0, %v229_v4 }
  0x17   : > { %v231_v6 = vmul.f32 %v388_v3, %v230_v5 }
  0x19   : > { %v232_v7 = vadd.f32 %v388_v3, %v231_v6 }
  0x1b   : > { %v234_v8 = vsel %vm233_vm1, %v388_v3, %v232_v7 }
  0x83   : > { %v227_v9 = vpop.xlane.xlu0 %226 }
  0x84   : > { %v235_v10 = vmul.f32 %v234_v8, %v227_v9 }
  0x86   : > { %v236_v11 = vsub.f32 %v221_v0, %v235_v10 }
  0x88   : > { %v237_v12 = vmul.f32 %v236_v11, %v236_v11 }
  0x8a   : > { %v238_v13 = vsel %vm224_vm0, %v237_v12, 0.0 }
  0x8b   : > { %239 = vadd.xlane.f32.xlu0 %v238_v13 }
  0xfe   : > { %v240_v16 = vpop.xlane.xlu0 %239 }
  0xff   : > { %v241_v17 = vmul.f32 %v240_v16, %v234_v8 }
 0x101   : > { %v242_v18 = vadd.f32 1e-05, %v241_v17 }
 0x103   : > { %389 = vrsqrt.f32 %v242_v18  ;;  %vm249_vm3 = vweird.f32 %v242_v18 }
 0x109   : > { %v390_v19 = vpop.eup %389 }
 0x10a   : > { %v244_v20 = vmul.f32 %v390_v19, %v242_v18  ;;  %vm250_vm2 = vweird.f32 %v390_v19 }
 0x10b   : > { %vm251_vm4 = vmor %vm249_vm3, %vm250_vm2 }
 0x10c   : > { %v245_v21 = vmul.f32 %v390_v19, %v244_v20 }
 0x10e   : > { %v246_v22 = vmul.f32 0.5, %v245_v21 }
 0x110   : > { %v247_v23 = vsub.f32 1.5, %v246_v22 }
 0x112   : > { %v248_v24 = vmul.f32 %v390_v19, %v247_v23 }
 0x114   : > { %v252_v26 = vsel %vm251_vm4, %v390_v19, %v248_v24 }
 0x115   : > { %v253_v27 = vmul.f32 %v252_v26, %v236_v11 }
 0x117   : > { %v257_v29 = vmul.f32 %v384_v25, %v253_v27 }
 0x119   : > { %v261_v30 = vadd.f32 %v385_v28, %v257_v29 }
 0x11b   : > { %v262_v31 = vpack.c.bf16 %v261_v30, %v261_v30 }
 0x11d   : > { %370 = vmatmul.msk.bf16.vlgmr.msra.gmra.mxu0 %vm224_vm0, %v262_v31 }
 0x19a   : > { %v295_v33 = vpop.f32.mrf.mxu0 }
 0x19b   : > { %v296_v34 = vadd.f32 %v386_v32, %v295_v33 }
 0x19d   : > { %v299_v35 = vpack.c.bf16 %v296_v34, %v296_v34 }
 0x19f   : > { %301 = vst.msk [vmem:[%s219_s12] sm:$0xf] %vm300_vm5, %v299_v35 }
 0x1a2   : > { %v297_v36 = vpop.f32.mrf.mxu0 }
 0x1a3 PF: > { %s15_s18 = sadd.s32 1, %s397_s18  }
 0x1a4   : > { %p12_p4 = scmp.ge.s32.totalorder %s15_s18, 4  }
 0x1a6   :  { %14 = sbr.rel (!%p12_p4) target bundleno = 1 (0x1), region = 70 }

// kernel: transformer_encoder.7
= control target key start
LH: loop header
LB: loop body
LE: loop exit
PB: predicated region body
PF: predicated region fallthrough
CT: control target
= control target key end

     0   :  { %s710_s12 = smov 0   ;;  %s712_s13 = smov 0   ;;  %s775_s0 = inlined_call_operand.vmem [shape: bf16[8,8,8], index: 0, kind: input, shape index: {}]   ;;  %s776_s1 = inlined_call_operand.vmem [shape: bf16[8,8,8], index: 1, kind: input, shape index: {}]   ;;  %s777_s2 = inlined_call_operand.vmem [shape: bf16[8,8,8], index: 2, kind: input, shape index: {}]   ;;  %s778_s3 = inlined_call_operand.vmem [shape: bf16[8,8,8], index: 3, kind: output, shape index: {}]  }
   0x1   :  { %s714_s14 = smov 0  }
   0x2 LB: > { %s25_s15 = sadd.s32 1, %s684_s13  ;;  %p607_p0 = scmp.ge.s32.totalorder %s688_s14, 1  ;;  %s688_s14 = sphi %s714_s14, %s13_s14   ;;  %s684_s13 = sphi %s712_s13, %s780_s13   ;;  %s680_s12 = sphi %s710_s12, %s779_s12  }
   0x3   : > { %p27_p1 = scmp.ge.s32.totalorder %s25_s15, 2  ;;  %p179_p2 = scmp.lt.s32.totalorder %s688_s14, 3 }
   0x5   : > { %s782_s15 = smov (%p27_p1, %s25_s15), 0  ;;  %p180_p3 = pnand %p607_p0, %p179_p2 }
   0x6   : > { %s608_s16 = sshll.u32 (!%p180_p3), %s680_s12, 2 }
   0x7   : > { %183 = sbr.rel (%p180_p3) target bundleno = 574 (0x23e), region = 32  ;;  %p220_p4 = scmp.lt.s32.totalorder (!%p180_p3), %s608_s16, 7 }
   0xc   : > { %s784_s16 = smov (!%p220_p4, %s608_s16), 7  ;;  %vm262_vm0 = vcmask 64512   ;;  %vm418_vm1 = vcmask 1043456   ;;  %vm496_vm2 = vcmask 60416  }
   0xd   : > { %s728_s17 = sshll.u32 %s784_s16, 2 }
   0xe   : > { %s232_s20 = scalar_lea.vmem %s776_s1, %s728_s17  ;;  %s226_s23 = scalar_lea.vmem %s775_s0, %s728_s17 }
   0xf   : > { %v254_v0 = vld [vmem:[%s232_s20] sm:$0xf]  ;;  %v256_v1 = vld [vmem:[%s232_s20 + $0x8] sm:$0xf]  ;;  %v257_v2 = vld [vmem:[%s232_s20 + $0xc] sm:$0xf]  ;;  %s238_s26 = scalar_lea.vmem %s777_s2, %s728_s17  ;;  %s247_s29 = scalar_lea.vmem %s778_s3, %s728_s17 }
  0x10   : > { %v267_v3 = vsel %vm262_vm0, %v254_v0, 0  ;;  %v305_v4 = vsel %vm262_vm0, %v256_v1, 0  ;;  %v324_v5 = vsel %vm262_vm0, %v257_v2, 0  ;;  %v255_v6 = vld [vmem:[%s232_s20 + $0x4] sm:$0xf] }
  0x11   : > { %276 = vmatpush.bf16.xpose.msra.mxu0 %v267_v3  ;;  %314 = vmatpush.bf16.xpose.msra.mxu2 %v305_v4  ;;  %v286_v7 = vsel %vm262_vm0, %v255_v6, 0  ;;  %v250_v8 = vld [vmem:[%s226_s23] sm:$0xf]  ;;  %v252_v9 = vld [vmem:[%s226_s23 + $0x8] sm:$0xf] }
  0x12   : > { %333 = vmatpush.bf16.xpose.msra.mxu3 %v324_v5  ;;  %295 = vmatpush.bf16.xpose.msra.mxu1 %v286_v7  ;;  %v253_v10 = vld [vmem:[%s226_s23 + $0xc] sm:$0xf]  ;;  %v251_v11 = vld [vmem:[%s226_s23 + $0x4] sm:$0xf]  ;;  %v258_v0 = vld [vmem:[%s238_s26] sm:$0xf] }
  0x13   : > { %v420_v1 = vsel %vm418_vm1, %v258_v0, 0  ;;  %v260_v2 = vld [vmem:[%s238_s26 + $0x8] sm:$0xf]  ;;  %v259_v4 = vld [vmem:[%s238_s26 + $0x4] sm:$0xf] }
  0x14   : > { %v458_v3 = vsel %vm418_vm1, %v260_v2, 0  ;;  %v439_v5 = vsel %vm418_vm1, %v259_v4, 0  ;;  %v261_v6 = vld [vmem:[%s238_s26 + $0xc] sm:$0xf] }
  0x15   : > { %v477_v7 = vsel %vm418_vm1, %v261_v6, 0 }
  0x18   : > { %616 = vmatmul.msk.bf16.vlgmr.msra.gmra.mxu0 %vm262_vm0, %v250_v8  ;;  %618 = vmatmul.msk.bf16.vlgmr.msra.gmra.mxu2 %vm262_vm0, %v252_v9 }
  0x19   : > { %619 = vmatmul.msk.bf16.vlgmr.msra.gmra.mxu3 %vm262_vm0, %v253_v10  ;;  %617 = vmatmul.msk.bf16.vlgmr.msra.gmra.mxu1 %vm262_vm0, %v251_v11 }
  0x1a   : > { %429 = vmatpush.bf16.msrb.mxu0 %v420_v1  ;;  %467 = vmatpush.bf16.msrb.mxu2 %v458_v3 }
  0x1b   : > { %448 = vmatpush.bf16.msrb.mxu1 %v439_v5  ;;  %486 = vmatpush.bf16.msrb.mxu3 %v477_v7 }
  0x95   : > { %v278_v12 = vpop.f32.mrf.mxu0 }
  0x96   : > { %v339_v13 = vmul.f32 0.35355338, %v278_v12  ;;  %v297_v14 = vpop.f32.mrf.mxu1 }
  0x97   : > { %v340_v16 = vmul.f32 0.35355338, %v297_v14 }
  0x98   : > { %v343_v15 = vsel %vm262_vm0, %v339_v13, -inf }
  0x99   : > { %344 = vmax.xlane.f32.xlu1 %v343_v15  ;;  %v346_v22 = vsel %vm262_vm0, %v340_v16, -inf }
  0x9b   : > { %v316_v17 = vpop.f32.mrf.mxu2 }
  0x9c   : > { %v341_v18 = vmul.f32 0.35355338, %v316_v17  ;;  %v335_v19 = vpop.f32.mrf.mxu3 }
  0x9d   : > { %v280_v20 = vpop.f32.mrf.mxu0  ;;  %v342_v24 = vmul.f32 0.35355338, %v335_v19 }
  0x9e   : > { %v349_v21 = vsel %vm262_vm0, %v341_v18, -inf  ;;  %v299_v23 = vpop.f32.mrf.mxu1 }
  0x9f   : > { %350 = vmax.xlane.f32.xlu0 %v349_v21  ;;  %v352_v27 = vsel %vm262_vm0, %v342_v24, -inf }
  0xa1   : > { %347 = vmax.xlane.f32.xlu1 %v346_v22 }
  0xa3   : > { %v318_v25 = vpop.f32.mrf.mxu2 }
  0xa4   : > { %v337_v26 = vpop.f32.mrf.mxu3 }
  0xa7   : > { %353 = vmax.xlane.f32.xlu0 %v352_v27 }
 0x10c   : > { %v345_v28 = vpop.xlane.xlu1 %344 }
 0x10d   : > { %v355_v29 = vsub.f32 %v339_v13, %v345_v28 }
 0x10f   : > { %v359_v30 = vpack.c.bf16 %v355_v29, %v355_v29 }
 0x111   : > { %v363_v31 = vunpack.c.l.bf16 %v359_v30 }
 0x112   : > { %v351_v32 = vpop.xlane.xlu0 %350 }
 0x113   : > { %v367_v33 = vmul.f32 1.442695, %v363_v31  ;;  %v357_v34 = vsub.f32 %v341_v18, %v351_v32 }
 0x114   : > { %v348_v35 = vpop.xlane.xlu1 %347 }
 0x115   : > { %650 = vpow2.f32 %v367_v33  ;;  %v361_v36 = vpack.c.bf16 %v357_v34, %v357_v34  ;;  %v356_v37 = vsub.f32 %v340_v16, %v348_v35 }
 0x117   : > { %v365_v38 = vunpack.c.l.bf16 %v361_v36  ;;  %v360_v39 = vpack.c.bf16 %v356_v37, %v356_v37 }
 0x119   : > { %v371_v40 = vmul.f32 1.442695, %v365_v38  ;;  %v364_v41 = vunpack.c.l.bf16 %v360_v39 }
 0x11a   : > { %v354_v42 = vpop.xlane.xlu0 %353 }
 0x11b   : > { %v651_v43 = vpop.eup %650  ;;  %652 = vpow2.f32 %v371_v40  ;;  %v369_v44 = vmul.f32 1.442695, %v364_v41  ;;  %v358_v45 = vsub.f32 %v342_v24, %v354_v42 }
 0x11c   : > { %v375_v46 = vpack.c.bf16 %v651_v43, %v651_v43 }
 0x11d   : > { %654 = vpow2.f32 %v369_v44  ;;  %v362_v47 = vpack.c.bf16 %v358_v45, %v358_v45 }
 0x11e   : > { %v379_v48 = vunpack.c.l.bf16 %v375_v46 }
 0x11f   : > { %v366_v49 = vunpack.c.l.bf16 %v362_v47 }
 0x120   : > { %v383_v50 = vsel %vm262_vm0, %v379_v48, 0.0 }
 0x121   : > { %v653_v51 = vpop.eup %652  ;;  %v373_v52 = vmul.f32 1.442695, %v366_v49  ;;  %384 = vadd.xlane.f32.xlu0 %v383_v50 }
 0x122   : > { %v377_v53 = vpack.c.bf16 %v653_v51, %v653_v51 }
 0x123   : > { %v655_v54 = vpop.eup %654  ;;  %656 = vpow2.f32 %v373_v52 }
 0x124   : > { %v381_v55 = vunpack.c.l.bf16 %v377_v53  ;;  %v376_v56 = vpack.c.bf16 %v655_v54, %v655_v54 }
 0x126   : > { %v389_v57 = vsel %vm262_vm0, %v381_v55, 0.0  ;;  %v380_v58 = vunpack.c.l.bf16 %v376_v56 }
 0x127   : > { %390 = vadd.xlane.f32.xlu2 %v389_v57 }
 0x128   : > { %v386_v59 = vsel %vm262_vm0, %v380_v58, 0.0 }
 0x129   : > { %v657_v60 = vpop.eup %656  ;;  %387 = vadd.xlane.f32.xlu1 %v386_v59 }
 0x12a   : > { %v378_v61 = vpack.c.bf16 %v657_v60, %v657_v60 }
 0x12c   : > { %v382_v62 = vunpack.c.l.bf16 %v378_v61 }
 0x12e   : > { %v392_v63 = vsel %vm262_vm0, %v382_v62, 0.0 }
 0x12f   : > { %393 = vadd.xlane.f32.xlu2 %v392_v63 }
 0x194   : > { %v385_v8 = vpop.xlane.xlu0 %384 }
 0x195   : > { %658 = vrcp.f32 %v385_v8 }
 0x19a   : > { %v391_v9 = vpop.xlane.xlu2 %390 }
 0x19b   : > { %v659_v10 = vpop.eup %658  ;;  %660 = vrcp.f32 %v391_v9 }
 0x19c   : > { %v399_v11 = vpack.c.bf16 %v659_v10, %v659_v10  ;;  %v388_v12 = vpop.xlane.xlu1 %387 }
 0x19d   : > { %662 = vrcp.f32 %v388_v12 }
 0x19e   : > { %v403_v13 = vunpack.c.l.bf16 %v399_v11 }
 0x1a0   : > { %v407_v14 = vmul.f32 %v403_v13, %v379_v48 }
 0x1a1   : > { %v661_v15 = vpop.eup %660 }
 0x1a2   : > { %v411_v16 = vpack.c.bf16 %v407_v14, %v407_v14  ;;  %v401_v17 = vpack.c.bf16 %v661_v15, %v661_v15  ;;  %v394_v18 = vpop.xlane.xlu2 %393 }
 0x1a3   : > { %v663_v19 = vpop.eup %662  ;;  %664 = vrcp.f32 %v394_v18 }
 0x1a4   : > { %v405_v20 = vunpack.c.l.bf16 %v401_v17  ;;  %v400_v21 = vpack.c.bf16 %v663_v19, %v663_v19  ;;  %620 = vmatmul.msk.bf16.vlgmr.msrb.gmra.mxu0 %vm262_vm0, %v411_v16 }
 0x1a6   : > { %v409_v22 = vmul.f32 %v405_v20, %v381_v55  ;;  %v404_v23 = vunpack.c.l.bf16 %v400_v21 }
 0x1a8   : > { %v413_v24 = vpack.c.bf16 %v409_v22, %v409_v22  ;;  %v408_v25 = vmul.f32 %v404_v23, %v380_v58 }
 0x1a9   : > { %v665_v26 = vpop.eup %664 }
 0x1aa   : > { %v412_v27 = vpack.c.bf16 %v408_v25, %v408_v25  ;;  %v402_v28 = vpack.c.bf16 %v665_v26, %v665_v26  ;;  %622 = vmatmul.msk.bf16.vlgmr.msrb.gmra.mxu2 %vm262_vm0, %v413_v24 }
 0x1ac   : > { %v406_v29 = vunpack.c.l.bf16 %v402_v28  ;;  %621 = vmatmul.msk.bf16.vlgmr.msrb.gmra.mxu1 %vm262_vm0, %v412_v27 }
 0x1ae   : > { %v410_v30 = vmul.f32 %v406_v29, %v382_v62 }
 0x1b0   : > { %v414_v31 = vpack.c.bf16 %v410_v30, %v410_v30 }
 0x1b2   : > { %623 = vmatmul.msk.bf16.vlgmr.msrb.gmra.mxu3 %vm262_vm0, %v414_v31 }
 0x221   : > { %v431_v32 = vpop.f32.mrf.mxu0 }
 0x222   : > { %v492_v33 = vpack.c.bf16 %v431_v32, %v431_v32 }
 0x224   : > { %497 = vst.msk [vmem:[%s247_s29] sm:$0xf] %vm496_vm2, %v492_v33 }
 0x229   : > { %v433_v34 = vpop.f32.mrf.mxu0  ;;  %v450_v35 = vpop.f32.mrf.mxu1 }
 0x22a   : > { %v493_v36 = vpack.c.bf16 %v450_v35, %v450_v35 }
 0x22c   : > { %498 = vst.msk [vmem:[%s247_s29 + $0x4] sm:$0xf] %vm496_vm2, %v493_v36 }
 0x22d   : > { %v469_v37 = vpop.f32.mrf.mxu2 }
 0x22e   : > { %v494_v38 = vpack.c.bf16 %v469_v37, %v469_v37 }
 0x230   : > { %499 = vst.msk [vmem:[%s247_s29 + $0x8] sm:$0xf] %vm496_vm2, %v494_v38 }
 0x231   : > { %v452_v39 = vpop.f32.mrf.mxu1 }
 0x235   : > { %v471_v40 = vpop.f32.mrf.mxu2  ;;  %v488_v41 = vpop.f32.mrf.mxu3 }
 0x236   : > { %v495_v42 = vpack.c.bf16 %v488_v41, %v488_v41 }
 0x238   : > { %500 = vst.msk [vmem:[%s247_s29 + $0xc] sm:$0xf] %vm496_vm2, %v495_v42 }
 0x23d   : > { %v490_v43 = vpop.f32.mrf.mxu3 }
 0x23e PF: > { %s13_s14 = sadd.s32 1, %s688_s14   ;;  %s779_s12 = smov %s684_s13 }
 0x23f   : > { %p10_p5 = scmp.ge.s32.totalorder %s13_s14, 4   ;;  %s780_s13 = smov %s782_s15 }
 0x241   :  { %12 = sbr.rel (!%p10_p5) target bundleno = 2 (0x2), region = 68 }

// kernel: transformer_encoder.8
= control target key start
LH: loop header
LB: loop body
LE: loop exit
PB: predicated region body
PF: predicated region fallthrough
CT: control target
= control target key end

     0   :  { %s824_s13 = smov 0   ;;  %s913_s0 = inlined_call_operand.vmem [shape: f32[16,32], index: 0, kind: input, shape index: {}]   ;;  %s914_s1 = inlined_call_operand.vmem [shape: bf16[16,32], index: 1, kind: input, shape index: {}]   ;;  %s915_s2 = inlined_call_operand.vmem [shape: bf16[32,32], index: 2, kind: input, shape index: {}]   ;;  %s916_s3 = inlined_call_operand.vmem [shape: f32[1,32], index: 3, kind: input, shape index: {}]   ;;  %s917_s4 = inlined_call_operand.vmem [shape: f32[1,32], index: 4, kind: input, shape index: {}]   ;;  %s918_s5 = inlined_call_operand.vmem [shape: f32[1,32], index: 5, kind: input, shape index: {}]   ;;  %s919_s6 = inlined_call_operand.vmem [shape: bf16[32,128], index: 6, kind: input, shape index: {}]   ;;  %s920_s7 = inlined_call_operand.vmem [shape: f32[1,128], index: 7, kind: input, shape index: {}]   ;;  %s921_s8 = inlined_call_operand.vmem [shape: bf16[128,32], index: 8, kind: input, shape index: {}]   ;;  %s922_s9 = inlined_call_operand.vmem [shape: f32[1,32], index: 9, kind: input, shape index: {}]   ;;  %s923_s10 = inlined_call_operand.vmem [shape: f32[16,32], index: 10, kind: output, shape index: {}]  }
   0x1 LB: > { %s664_s14 = sadd.s32 4294967295, %s765_s13   ;;  %p668_p0 = scmp.ge.s32.totalorder %s765_s13, 1  ;;  %s765_s13 = sphi %s824_s13, %s20_s13  }
   0x2   : > { %p320_p1 = scmp.lt.s32.totalorder %s765_s13, 3 }
   0x4   : > { %p321_p2 = pnand %p668_p0, %p320_p1 }
   0x5   : > { %p360_p3 = scmp.lt.s32.totalorder (!%p321_p2), %s664_s14, 1 }
   0x6   : > { %324 = sbr.rel (%p321_p2) target bundleno = 732 (0x2dc), region = 60 }
   0xb   : > { %v725_v0 = vld [vmem:[%s915_s2 + $0x8] sm:$0xff]  ;;  %v724_v1 = vld [vmem:[%s915_s2] sm:$0xff]  ;;  %s925_s14 = smov (!%p360_p3, %s664_s14), 1  ;;  %vm395_vm0 = vcmask 261120   ;;  %v767_v10 = vmov 32.0   ;;  %v735_v40 = vld [vmem:[%s921_s8 + $0x38] sm:$0xff] }
   0xc   : > { %405 = vmatpush.bf16.msra.mxu0 %v725_v0  ;;  %s670_s19 = sshll.u32 %s925_s14, 2  ;;  %s669_s23 = sshll.u32 %s925_s14, 3  ;;  %v746_v3 = vld [vmem:[%s916_s3] ss:$0 sm:$0xff]  ;;  %751 = vrcp.f32 %v767_v10  ;;  %v727_v22 = vld [vmem:[%s919_s6 + $0x8] sm:$0xff]  ;;  %584 = vmatpush.bf16.msra.mxu2 %v735_v40  ;;  %v734_v41 = vld [vmem:[%s921_s8 + $0x30] sm:$0xff] }
   0xd   : > { %s367_s22 = scalar_lea.vmem %s914_s1, %s670_s19  ;;  %s363_s26 = scalar_lea.vmem %s913_s0, %s669_s23  ;;  %482 = vmatpush.bf16.msra.mxu1 %v727_v22  ;;  %v726_v23 = vld [vmem:[%s919_s6] sm:$0xff]  ;;  %v733_v42 = vld [vmem:[%s921_s8 + $0x28] sm:$0xff]  ;;  %v731_v44 = vld [vmem:[%s921_s8 + $0x18] sm:$0xff] }
   0xe   : > { %v374_v2 = vld [vmem:[%s367_s22] sm:$0xf]  ;;  %v730_v46 = vld [vmem:[%s921_s8 + $0x10] sm:$0xff]  ;;  %v729_v50 = vld [vmem:[%s921_s8 + $0x8] sm:$0xff]  ;;  %s371_s25 = scalar_lea.vmem %s923_s10, %s669_s23 }
   0xf   : > { %v373_v4 = vld [vmem:[%s363_s26] sm:$0xff] }
  0x10   : > { %406 = vmatpush.bf16.msra.mxu0 %v724_v1  ;;  %v747_v33 = vld [vmem:[%s917_s4] ss:$0 sm:$0xff]  ;;  %585 = vmatpush.bf16.msra.mxu2 %v734_v41 }
  0x11   : > { %483 = vmatpush.bf16.msra.mxu1 %v726_v23  ;;  %v748_v36 = vld [vmem:[%s918_s5] ss:$0 sm:$0xff] }
  0x12   : > { %v752_v11 = vpop.eup %751  ;;  %v732_v43 = vld [vmem:[%s921_s8 + $0x20] sm:$0xff] }
  0x13   : > { %680 = vmatmul.msk.bf16.vlgmr.msra.gmra.mxu0 %vm395_vm0, %v374_v2  ;;  %v419_v12 = vmul.f32 32.0, %v752_v11  ;;  %vm423_vm1 = vweird.f32 %v752_v11  ;;  %v749_v45 = vld [vmem:[%s920_s7] ss:$0 sm:$0xff] }
  0x14   : > { %586 = vmatpush.bf16.msra.mxu2 %v733_v42  ;;  %v728_v53 = vld [vmem:[%s921_s8] sm:$0xff] }
  0x15   : > { %v420_v13 = vsub.f32 1.0, %v419_v12 }
  0x17   : > { %v421_v14 = vmul.f32 %v752_v11, %v420_v13 }
  0x18   : > { %587 = vmatpush.bf16.msra.mxu2 %v732_v43 }
  0x19   : > { %v422_v15 = vadd.f32 %v752_v11, %v421_v14 }
  0x1b   : > { %v424_v16 = vsel %vm423_vm1, %v752_v11, %v422_v15 }
  0x1c   : > { %588 = vmatpush.bf16.msra.mxu2 %v731_v44 }
  0x20   : > { %589 = vmatpush.bf16.msra.mxu2 %v730_v46 }
  0x24   : > { %590 = vmatpush.bf16.msra.mxu2 %v729_v50 }
  0x28   : > { %591 = vmatpush.bf16.msra.mxu2 %v728_v53 }
  0x90   : > { %v408_v5 = vpop.f32.mrf.mxu0 }
  0x91   : > { %v409_v6 = vadd.f32 %v746_v3, %v408_v5 }
  0x93   : > { %v854_v7 = vadd.f32 %v409_v6, %v373_v4 }
  0x95   : > { %v415_v8 = vsel %vm395_vm0, %v854_v7, 0.0 }
  0x96   : > { %416 = vadd.xlane.f32.xlu0 %v415_v8 }
  0x98   : > { %v410_v9 = vpop.f32.mrf.mxu0 }
  0x99   : > { %v768_v9 = vmov -1.0  }
 0x109   : > { %v417_v17 = vpop.xlane.xlu0 %416 }
 0x10a   : > { %v425_v18 = vmul.f32 %v424_v16, %v417_v17 }
 0x10c   : > { %v426_v19 = vsub.f32 %v854_v7, %v425_v18 }
 0x10e   : > { %v427_v20 = vmul.f32 %v426_v19, %v426_v19 }
 0x110   : > { %v428_v21 = vsel %vm395_vm0, %v427_v20, 0.0 }
 0x111   : > { %429 = vadd.xlane.f32.xlu0 %v428_v21 }
 0x184   : > { %v430_v24 = vpop.xlane.xlu0 %429 }
 0x185   : > { %v431_v25 = vmul.f32 %v430_v24, %v424_v16  ;;  %v750_v16 = vld [vmem:[%s922_s9] ss:$0 sm:$0xff] }
 0x187   : > { %v432_v26 = vadd.f32 1e-05, %v431_v25 }
 0x189   : > { %753 = vrsqrt.f32 %v432_v26  ;;  %vm439_vm3 = vweird.f32 %v432_v26 }
 0x18f   : > { %v754_v27 = vpop.eup %753 }
 0x190   : > { %v434_v28 = vmul.f32 %v754_v27, %v432_v26  ;;  %vm440_vm2 = vweird.f32 %v754_v27 }
 0x191   : > { %vm441_vm4 = vmor %vm439_vm3, %vm440_vm2 }
 0x192   : > { %v435_v29 = vmul.f32 %v754_v27, %v434_v28 }
 0x194   : > { %v436_v30 = vmul.f32 0.5, %v435_v29 }
 0x196   : > { %v437_v31 = vsub.f32 1.5, %v436_v30 }
 0x198   : > { %v438_v32 = vmul.f32 %v754_v27, %v437_v31 }
 0x19a   : > { %v442_v34 = vsel %vm441_vm4, %v754_v27, %v438_v32 }
 0x19b   : > { %v443_v35 = vmul.f32 %v442_v34, %v426_v19 }
 0x19d   : > { %v447_v37 = vmul.f32 %v747_v33, %v443_v35 }
 0x19f   : > { %v451_v38 = vadd.f32 %v748_v36, %v447_v37 }
 0x1a1   : > { %v452_v39 = vpack.c.bf16 %v451_v38, %v451_v38 }
 0x1a3   : > { %689 = vmatmul.msk.bf16.vlgmr.msra.gmra.mxu1 %vm395_vm0, %v452_v39 }
 0x220   : > { %v485_v47 = vpop.f32.mrf.mxu1 }
 0x221   : > { %v486_v48 = vadd.f32 %v749_v45, %v485_v47 }
 0x223   : > { %v490_v49 = vmul.f32 0.70710677, %v486_v48  ;;  %v489_v12 = vmul.f32 0.5, %v486_v48 }
 0x225   : > { %v493_v51 = vand.u32 2147483647, %v490_v49  ;;  %vm491_vm5 = vcmp.ge.f32.partialorder %v490_v49, 0.0 }
 0x226   : > { %v492_v10 = vsel %vm491_vm5, 1.0, %v768_v9 }
 0x227   : > { %v494_v52 = vmul.f32 0.3275911, %v493_v51  ;;  %v506_v57 = vsub.f32 0.0, %v493_v51 }
 0x228   : > { %v487_v54 = vpop.f32.mrf.mxu1 }
 0x229   : > { %v495_v55 = vadd.f32 1.0, %v494_v52  ;;  %v507_v60 = vmul.f32 %v506_v57, %v493_v51 }
 0x22b   : > { %755 = vrcp.f32 %v495_v55  ;;  %v508_v63 = vmul.f32 1.442695, %v507_v60 }
 0x22d   : > { %757 = vpow2.f32 %v508_v63 }
 0x231   : > { %v756_v56 = vpop.eup %755 }
 0x232   : > { %v497_v58 = vmul.f32 1.0614054, %v756_v56 }
 0x233   : > { %v758_v5 = vpop.eup %757 }
 0x234   : > { %v498_v59 = vadd.f32 -1.4531521, %v497_v58 }
 0x236   : > { %v499_v61 = vmul.f32 %v756_v56, %v498_v59 }
 0x238   : > { %v500_v62 = vadd.f32 1.4214138, %v499_v61 }
 0x23a   : > { %v501_v0 = vmul.f32 %v756_v56, %v500_v62 }
 0x23c   : > { %v502_v1 = vadd.f32 -0.28449672, %v501_v0 }
 0x23e   : > { %v503_v2 = vmul.f32 %v756_v56, %v502_v1 }
 0x240   : > { %v504_v3 = vadd.f32 0.2548296, %v503_v2 }
 0x242   : > { %v505_v4 = vmul.f32 %v756_v56, %v504_v3 }
 0x244   : > { %v510_v6 = vmul.f32 %v758_v5, %v505_v4 }
 0x246   : > { %v511_v8 = vsub.f32 1.0, %v510_v6 }
 0x248   : > { %v512_v11 = vmul.f32 %v511_v8, %v492_v10 }
 0x24a   : > { %v513_v13 = vadd.f32 1.0, %v512_v11 }
 0x24c   : > { %v514_v14 = vmul.f32 %v513_v13, %v489_v12 }
 0x24e   : > { %v515_v15 = vpack.c.bf16 %v514_v14, %v514_v14 }
 0x250   : > { %592 = vmatmul.bf16.vlgmr.msra.gmra.mxu2 %v515_v15 }
 0x2d3   : > { %v593_v17 = vpop.f32.mrf.mxu2 }
 0x2d4   : > { %v594_v18 = vadd.f32 %v750_v16, %v593_v17 }
 0x2d6   : > { %v597_v19 = vadd.f32 %v594_v18, %v854_v7 }
 0x2d8   : > { %598 = vst.msk [vmem:[%s371_s25] sm:$0xff] %vm395_vm0, %v597_v19 }
 0x2db   : > { %v595_v20 = vpop.f32.mrf.mxu2 }
 0x2dc PF: > { %s20_s13 = sadd.s32 1, %s765_s13  }
 0x2dd   : > { %p17_p4 = scmp.ge.s32.totalorder %s20_s13, 4  }
 0x2df   :  { %19 = sbr.rel (!%p17_p4) target bundleno = 1 (0x1), region = 93 }

</bundles_post_ra>
